<compile_context>
chip_gen: v7x
topology: tpu7x:2x2x1
jax: 0.10.0
libtpu: 0.0.40
codegen_flags: <defaults>
</compile_context>

<pallas_src>
import math

import jax
import jax.numpy as jnp
from jax.experimental import pallas as pl
from jax.experimental.pallas import tpu as pltpu


def _norm1d_kernel(x_ref, a_ref, b_ref, o_ref):
    # y = x * a + b  (a, b are the folded per-feature affine, f32)
    o_ref[...] = (x_ref[...] * a_ref[...] + b_ref[...]).astype(o_ref.dtype)


def _round_up(x, m):
    return (x + m - 1) // m * m


def _vmem_capacity_bytes():
    """Physical VMEM of the current chip; conservative default if unknown."""
    try:
        cap = int(pltpu.get_tpu_info().vmem_capacity_bytes)
        if cap > 0:
            return cap
    except Exception:
        pass
    return 64 << 20  # v7x per-TC capacity: safe lower bound on every generation


def norm_function_1d(x, m, v, gamma, beta, *, eps=1e-5, block_rows=None,
                     force_pallas=False):
    """Pallas implementation of NormFunction1D.forward.

    x: (N, F); m, v, gamma, beta: (1, F). Returns (N, F) in x.dtype.
    """
    N, F = x.shape
    assert m.shape == (1, F) and v.shape == (1, F)
    assert gamma.shape == (1, F) and beta.shape == (1, F)
    itemsize = jnp.dtype(x.dtype).itemsize

    # Fold the per-feature affine once (tiny (1, F) work, f32 for accuracy).
    a = gamma.astype(jnp.float32) * jax.lax.rsqrt(
        v.astype(jnp.float32) + jnp.float32(eps))
    b = beta.astype(jnp.float32) - m.astype(jnp.float32) * a

    # Tiny-problem bypass: a standalone pallas_call's launch/pipeline overhead
    # dwarfs the work; let XLA fuse it instead.
    if not force_pallas and N * F * itemsize <= (128 << 10):
        return (x * a + b).astype(x.dtype)

    # ---- Lane-densify only when it is a free (row-major) reshape. ----
    k = 1 if F % 128 == 0 else 128 // math.gcd(F, 128)
    if k > 1 and N % k == 0:
        fold, R, FF = True, N // k, k * F
    else:
        fold, R, FF, k = False, N, F, 1

    a_t = jnp.tile(a, (1, k)) if k > 1 else a
    b_t = jnp.tile(b, (1, k)) if k > 1 else b

    # ---- Row tiling (folded-row units), sized from the chip's VMEM. ----
    sub = max(8, 32 // itemsize)                # 8 f32 / 16 bf16 / 32 int8
    row_bytes = FF * itemsize
    vmem_cap = _vmem_capacity_bytes()
    # Double-buffered in + out = 4x tile; leave headroom for params + misc.
    max_tile_bytes = max(sub * row_bytes,
                         (int(vmem_cap * 0.8) - (2 << 20)) // 4)

    if block_rows is None:
        target_tile = min(int(vmem_cap * 0.45) // 4, 16 << 20)
        br = max(sub, (target_tile // row_bytes) // sub * sub)
        # Keep >= 2 grid steps when possible so v7x's 2 TCs both get work.
        if R > sub:
            br = min(br, _round_up(pl.cdiv(R, 2), sub))
    else:
        br = max(sub, _round_up(block_rows, sub))
    br = min(br, _round_up(max(R, 1), sub))
    # Clamp so the double-buffered footprint always fits the declared limit.
    br = min(br, max(sub, (max_tile_bytes // row_bytes) // sub * sub))

    tile_bytes = br * row_bytes
    param_bytes = 2 * 2 * 8 * FF * 4            # a, b: (1,FF) f32, 2 bufs, 8-sublane pad
    vmem_limit = 4 * tile_bytes + param_bytes + (2 << 20)
    vmem_limit = int(min(max(vmem_limit, 16 << 20), int(vmem_cap * 0.9)))

    grid = (pl.cdiv(R, br),)                    # ragged last block handled by Pallas
    xr = x.reshape(R, FF) if fold else x        # zero-copy row-major reshape

    row_spec = pl.BlockSpec((br, FF), lambda i: (i, 0))
    param_spec = pl.BlockSpec((1, FF), lambda i: (0, 0))

    out = pl.pallas_call(
        _norm1d_kernel,
        out_shape=jax.ShapeDtypeStruct((R, FF), x.dtype),
        grid_spec=pltpu.PrefetchScalarGridSpec(
            num_scalar_prefetch=0,
            grid=grid,
            in_specs=[row_spec, param_spec, param_spec],
            out_specs=row_spec,
        ),
        compiler_params=pltpu.CompilerParams(
            dimension_semantics=("parallel",),
            vmem_limit_bytes=vmem_limit,
        ),
    )(xr, a_t, b_t)

    return out.reshape(N, F) if fold else out


def _reference(x, m, v, gamma, beta, eps=1e-5):
    return (x - m) / jnp.sqrt(v + eps) * gamma + beta


if __name__ == "__main__":
    key = jax.random.PRNGKey(0)

    # --- Case 1: module's native toy shape, parameters as in __init__,
    #     forced through the Pallas path (lane-folded to (2, 128)). ---
    N, F = 8, 32
    x = jax.random.normal(key, (N, F), dtype=jnp.float32)
    gamma = jnp.ones((1, F), dtype=jnp.float32)
    beta = jnp.zeros((1, F), dtype=jnp.float32)
    m = jnp.ones((1, F), dtype=jnp.float32)
    v = jnp.ones((1, F), dtype=jnp.float32)

    y = jax.block_until_ready(
        norm_function_1d(x, m, v, gamma, beta, force_pallas=True))
    y_ref = _reference(x, m, v, gamma, beta)
    assert y.shape == (N, F) and y.dtype == jnp.float32
    assert jnp.allclose(y, y_ref, atol=1e-5, rtol=1e-5), "mismatch (case 1)"

    # --- Case 2: fold-aligned batch with multiple grid steps (tests the
    #     lane-dense path + the parallel row grid). ---
    k1, k2, k3, k4, k5 = jax.random.split(jax.random.PRNGKey(0), 5)
    N2, F2 = 64, 32
    x2 = jax.random.normal(k1, (N2, F2), dtype=jnp.float32)
    gamma2 = jax.random.normal(k2, (1, F2), dtype=jnp.float32)
    beta2 = jax.random.normal(k3, (1, F2), dtype=jnp.float32)
    m2 = jax.random.normal(k4, (1, F2), dtype=jnp.float32)
    v2 = jnp.abs(jax.random.normal(k5, (1, F2), dtype=jnp.float32)) + 0.5
    y2 = jax.block_until_ready(
        norm_function_1d(x2, m2, v2, gamma2, beta2, block_rows=8,
                         force_pallas=True))
    assert jnp.allclose(y2, _reference(x2, m2, v2, gamma2, beta2),
                        atol=1e-4, rtol=1e-4), "mismatch (case 2)"

    # --- Case 3: non-fold-aligned batch -> no lane fold, ragged last row
    #     block (exercises Pallas masking of the partial block; no pad/slice). ---
    N3 = 50
    x3 = jax.random.normal(k1, (N3, F2), dtype=jnp.float32)
    y3 = jax.block_until_ready(
        norm_function_1d(x3, m2, v2, gamma2, beta2, block_rows=8,
                         force_pallas=True))
    assert y3.shape == (N3, F2)
    assert jnp.allclose(y3, _reference(x3, m2, v2, gamma2, beta2),
                        atol=1e-4, rtol=1e-4), "mismatch (case 3)"

    # --- Case 4: tiny-problem bypass path (no pallas_call). ---
    y4 = jax.block_until_ready(norm_function_1d(x, m, v, gamma, beta))
    assert jnp.allclose(y4, y_ref, atol=1e-5, rtol=1e-5), "mismatch (case 4)"

    print("KERNEL_OK")
</pallas_src>

<mosaic_0001>
module attributes {stable_mosaic.version = 11 : i64} {
  func.func @_norm1d_kernel(%arg0: i32, %arg1: memref<8x128xf32, #tpu.memory_space<vmem>>, %arg2: memref<1x128xf32, #tpu.memory_space<vmem>>, %arg3: memref<1x128xf32, #tpu.memory_space<vmem>>, %arg4: memref<8x128xf32, #tpu.memory_space<vmem>>) attributes {dimension_semantics = [#tpu.dimension_semantics<parallel>], iteration_bounds = array<i64: 1>, scalar_prefetch = 0 : i64, scratch_operands = 0 : i64, tpu.core_type = #tpu.core_type<tc>, window_params = [{transform_indices = @transform_0, window_bounds = array<i64: 8, 128>}, {pipeline_mode = #tpu.pipeline_mode<synchronous>, transform_indices = @transform_1, window_bounds = array<i64: 1, 128>}, {pipeline_mode = #tpu.pipeline_mode<synchronous>, transform_indices = @transform_2, window_bounds = array<i64: 1, 128>}, {transform_indices = @transform_3, window_bounds = array<i64: 8, 128>}]} {
    %c0 = arith.constant 0 : index
    %c0_0 = arith.constant 0 : index
    %0 = vector.load %arg1[%c0, %c0_0] : memref<8x128xf32, #tpu.memory_space<vmem>>, vector<8x128xf32>
    %c0_1 = arith.constant 0 : index
    %c0_2 = arith.constant 0 : index
    %1 = vector.load %arg2[%c0_1, %c0_2] : memref<1x128xf32, #tpu.memory_space<vmem>>, vector<1x128xf32>
    %2 = vector.broadcast %1 : vector<1x128xf32> to vector<8x128xf32>
    %3 = arith.mulf %0, %2 : vector<8x128xf32>
    %c0_3 = arith.constant 0 : index
    %c0_4 = arith.constant 0 : index
    %4 = vector.load %arg3[%c0_3, %c0_4] : memref<1x128xf32, #tpu.memory_space<vmem>>, vector<1x128xf32>
    %5 = vector.broadcast %4 : vector<1x128xf32> to vector<8x128xf32>
    %6 = arith.addf %3, %5 : vector<8x128xf32>
    %c0_5 = arith.constant 0 : index
    %c0_6 = arith.constant 0 : index
    %7 = vector.load %arg4[%c0_5, %c0_6] : memref<8x128xf32, #tpu.memory_space<vmem>>, vector<8x128xf32>
    tpu.vector_store %arg4[%c0_5, %c0_6], %6 {strides = array<i32>} : memref<8x128xf32, #tpu.memory_space<vmem>>, vector<8x128xf32>,
    return
  }
  func.func @transform_0(%arg0: i32) -> (i32, i32) {
    %c0_i32 = arith.constant 0 : i32
    %c0_i32_0 = arith.constant 0 : i32
    return %arg0, %c0_i32 : i32, i32
  }
  func.func @transform_1(%arg0: i32) -> (i32, i32) {
    %c0_i32 = arith.constant 0 : i32
    %c0_i32_0 = arith.constant 0 : i32
    %c0_i32_1 = arith.constant 0 : i32
    return %c0_i32, %c0_i32_0 : i32, i32
  }
  func.func @transform_2(%arg0: i32) -> (i32, i32) {
    %c0_i32 = arith.constant 0 : i32
    %c0_i32_0 = arith.constant 0 : i32
    %c0_i32_1 = arith.constant 0 : i32
    return %c0_i32, %c0_i32_0 : i32, i32
  }
  func.func @transform_3(%arg0: i32) -> (i32, i32) {
    %c0_i32 = arith.constant 0 : i32
    %c0_i32_0 = arith.constant 0 : i32
    return %arg0, %c0_i32 : i32, i32
  }
}

</mosaic_0001>

<bundles_post_ra>
// kernel: tpu_custom_call.1
= control target key start
LH: loop header
LB: loop body
LE: loop exit
PB: predicated region body
PF: predicated region fallthrough
CT: control target
= control target key end

     0   :  { %8 = vsyncpa [#allocation3], 0  ;;  %s178_s0 = inlined_call_operand.hbm [shape: f32[2,128], index: 0, kind: input, shape index: {}]   ;;  %s179_s1 = inlined_call_operand.vmem [shape: f32[1,128], index: 1, kind: input, shape index: {}]   ;;  %s180_s2 = inlined_call_operand.vmem [shape: f32[1,128], index: 2, kind: input, shape index: {}]   ;;  %s181_s3 = inlined_call_operand.hbm [shape: f32[2,128], index: 3, kind: output, shape index: {}]  }
   0x1   :  { %9 = vsyncpa [#allocation4], 0 }
   0x2   :  { %14 = vsyncadd [#allocation3], 96  ;;  %s118_s12 = smov [#allocation2]   ;;  %s70_s16 = scalar_lea.hbm %s178_s0, 32 }
   0x3   :  { %s15_s13 = sshll.u32 %s118_s12, 4  ;;  %p71_p0 = scmp.ne.s32.totalorder %s178_s0, %s70_s16  ;;  %s16_s13 = int_to_ptr.vmem [resolvable:$true] %s15_s13 }
   0x4   :  { %p74_p1 = scmp.lt.u32.totalorder %s70_s16, %s178_s0 }
   0x6   :  { %p76_p2 = pnand %p74_p1, %p71_p0 }
   0x8   :  { %79 = shalt.err (!%p76_p2)
}
   0x9   :  { %s80_s21 = scalar_lea.vmem %s16_s13, 32  ;;  %s84_s22 = scalar_lea.vmem %s16_s13, 128 }
   0xa   :  { %p81_p3 = scmp.ne.s32.totalorder %s16_s13, %s80_s21  ;;  %p85_p4 = scmp.lt.s32.totalorder %s16_s13, %s16_s13 }
   0xb   :  { %p86_p5 = scmp.lt.s32.totalorder %s84_s22, %s80_s21 }
   0xd   :  { %p87_p6 = por %p86_p5, %p85_p4 }
   0xf   :  { %p88_p7 = pnand %p87_p6, %p81_p3 }
  0x11   :  { %91 = shalt.err (!%p88_p7)
}
  0x12   :  { %s119_s23 = smov 32   ;;  %s120_s24 = smov 2  }
  0x13   :  { %21 = dma.hbm_to_vmem [thread:$0]  %s178_s0, 32, %s16_s13, [#allocation3], %s119_s23, %s119_s23, %s120_s24  }
  0x14   :  { %114 = dma.done.wait [#allocation3], 128  }
  0x15   :  { %115 = vsyncadd [#allocation3], 4294967168  ;;  %v29_v0 = vld [vmem:[#allocation2] sm:$0xff] }
  0x16   :  { %v64_v1 = vld [vmem:[%s179_s1] ss:$0 sm:$0xff] }
  0x17   :  { %v65_v2 = vld [vmem:[%s180_s2] ss:$0 sm:$0xff]  ;;  %v37_v3 = vmul.f32 %v64_v1, %v29_v0 }
  0x19   :  { %v45_v4 = vadd.f32 %v65_v2, %v37_v3 }
  0x1b   :  { %46 = vst [vmem:[#allocation5] sm:$0xff] %v45_v4 }
  0x1c   :  { %51 = vsyncadd [#allocation4], 96  ;;  %s121_s4 = smov [#allocation5]  }
  0x1d   :  { %s52_s5 = sshll.u32 %s121_s4, 4  ;;  %s53_s5 = int_to_ptr.vmem [resolvable:$true] %s52_s5 }
  0x1e   :  { %s92_s6 = scalar_lea.vmem %s53_s5, 32  ;;  %s96_s0 = scalar_lea.vmem %s53_s5, 128 }
  0x1f   :  { %p93_p8 = scmp.ne.s32.totalorder %s53_s5, %s92_s6  ;;  %p97_p9 = scmp.lt.s32.totalorder %s53_s5, %s53_s5 }
  0x20   :  { %p98_p10 = scmp.lt.s32.totalorder %s96_s0, %s92_s6 }
  0x22   :  { %p99_p11 = por %p98_p10, %p97_p9 }
  0x24   :  { %p100_p12 = pnand %p99_p11, %p93_p8 }
  0x26   :  { %103 = shalt.err (!%p100_p12)
}
  0x27   :  { %s104_s8 = scalar_lea.hbm %s181_s3, 32 }
  0x28   :  { %p105_p13 = scmp.ne.s32.totalorder %s181_s3, %s104_s8  ;;  %p108_p0 = scmp.lt.u32.totalorder %s104_s8, %s181_s3 }
  0x2a   :  { %p110_p1 = pnand %p108_p0, %p105_p13 }
  0x2c   :  { %113 = shalt.err (!%p110_p1)
}
  0x2d   :  { %58 = dma.vmem_to_hbm [thread:$0]  %s53_s5, 32, %s181_s3, [#allocation4], %s119_s23, %s119_s23, %s120_s24  }
  0x2e   :  { %116 = dma.done.wait [#allocation4], 128  }
  0x2f   :  { %117 = vsyncadd [#allocation4], 4294967168 }
  0x30   :  { %62 = vsyncpa [#allocation3], 1 }
  0x31   :  { %63 = vsyncpa [#allocation4], 1 }

</bundles_post_ra>
